<compile_context>
chip_gen: v7x
topology: tpu7x:2x2x1
jax: 0.10.0
libtpu: 0.0.40
codegen_flags: <defaults>
</compile_context>

<pallas_src>
import functools

import jax
import jax.numpy as jnp
from jax.experimental import pallas as pl
from jax.experimental.pallas import tpu as pltpu


def _round_up(x, m):
    return (x + m - 1) // m * m


def _vmem_per_step_bytes(lt, c_in_p, c_out_p, kc, halo_pad, b_in, b_out, k):
    """Rough per-grid-step live-VMEM estimate used for adaptive tile selection."""
    return (2 * c_in_p * lt * b_in                       # input tile double-buffer
            + 2 * c_in_p * halo_pad * b_in               # halo tile double-buffer
            + 2 * c_out_p * lt * b_out                   # output tile double-buffer
            + 2 * c_out_p * (kc + 1) * 4                 # resident weights + bias
            + (k + 1) * c_in_p * (lt + halo_pad) * b_in  # window + stacked temps
            + 4 * c_out_p * lt)                          # f32 accumulator


def _conv1d_kernel_halo(x_ref, halo_ref, w_ref, b_ref, o_ref, *,
                        kernel_size, dilation, pad, halo_pad):
    """One (batch, length-tile) grid step.

    x_ref:    (1, C_in_p, lt)        current input tile (length on lanes)
    halo_ref: (1, C_in_p, halo_pad)  columns immediately preceding this tile
                                     (index clamped at 0; zeroed when j == 0 --
                                     this IS the causal left zero-pad)
    w_ref:    (C_out_p, K*C_in_p)    tap-folded weights
    b_ref:    (C_out_p, 1)           bias (f32)
    o_ref:    (1, C_out_p, lt)       output tile (lane-dense store)
    """
    x = x_ref[0]                                          # (C_in_p, lt)
    lt = x.shape[-1]

    halo = halo_ref[0]                                    # (C_in_p, halo_pad)
    halo = jnp.where(pl.program_id(1) > 0, halo, jnp.zeros_like(halo))
    window = jnp.concatenate([halo, x], axis=-1)          # (C_in_p, halo_pad + lt)

    # Fold K taps into one wide-contraction matmul:
    #   stacked[k*C_in_p + c, l] = x_causal[c, l + k*dilation - pad]
    base = halo_pad - pad
    taps = [window[:, base + k * dilation: base + k * dilation + lt]
            for k in range(kernel_size - 1)]
    taps.append(x)                                        # tap K-1 has offset == pad -> x itself
    stacked = jnp.concatenate(taps, axis=0)               # (K*C_in_p, lt)

    acc = jnp.dot(w_ref[...], stacked, preferred_element_type=jnp.float32)
    acc = acc + b_ref[...]                                # f32 bias add
    o_ref[0] = acc.astype(o_ref.dtype)                    # cast only at the store


def _conv1d_kernel_nohalo(x_ref, w_ref, b_ref, o_ref):
    """K == 1 (or pad == 0): plain pointwise matmul, no halo needed."""
    acc = jnp.dot(w_ref[...], x_ref[0], preferred_element_type=jnp.float32)
    acc = acc + b_ref[...]
    o_ref[0] = acc.astype(o_ref.dtype)


def causal_conv1d(x_ncl, weight, bias, *, dilation=1, l_tile=None,
                  compute_dtype=None):
    """Equivalent of Conv1D.forward: ZeroPad1d(((K-1)*d, 0)) then Conv1d(dilation=d).

    x_ncl:  (N, C_in, L)      -- PyTorch NCL layout
    weight: (C_out, C_in, K)  -- PyTorch Conv1d weight layout
    bias:   (C_out,)
    compute_dtype: optional (e.g. jnp.bfloat16) for the HBM-resident x / weights;
                   accumulation stays f32 and the output dtype is unchanged.
    returns (N, C_out, L)
    """
    N, C_in, L = x_ncl.shape
    C_out, _, K = weight.shape
    pad = (K - 1) * dilation

    out_dtype = x_ncl.dtype
    in_dtype = jnp.dtype(compute_dtype) if compute_dtype is not None else jnp.dtype(x_ncl.dtype)
    b_in = in_dtype.itemsize
    b_out = jnp.dtype(out_dtype).itemsize
    sub = max(8, 32 // b_in)                 # sublane multiple: 8 (f32), 16 (bf16)

    # Channel padding -> aligned sublane layouts for the MXU operands / output tile.
    C_in_p = _round_up(C_in, sub)
    C_out_p = _round_up(C_out, sub)
    kc = K * C_in_p

    halo_pad = _round_up(pad, 128) if pad > 0 else 0
    lane_quant = max(halo_pad, 128)          # tile must be a multiple of this
    l_needed = _round_up(L, lane_quant)

    # Generation-aware VMEM budget (64 MiB on v7x, 128 MiB on v5e/v6e).
    try:
        info = pltpu.get_tpu_info()
        vmem_cap = int(getattr(info, "vmem_capacity_bytes", 64 << 20))
    except Exception:  # no TPU info available -> conservative (v7x-sized) default
        vmem_cap = 64 << 20
    budget = int(vmem_cap * 0.55)
    vmem_limit = int(vmem_cap * 0.80)

    # Adaptive length tile: largest candidate that fits the budget (or user override).
    if l_tile is not None:
        lt = max(lane_quant, min(_round_up(l_tile, lane_quant), l_needed))
    else:
        lt = lane_quant
        for cand in (4096, 2048, 1024, 512, 256, 128):
            c = max(lane_quant, min(_round_up(cand, lane_quant), l_needed))
            if _vmem_per_step_bytes(c, C_in_p, C_out_p, kc, halo_pad,
                                    b_in, b_out, K) <= budget:
                lt = c
                break
    l_full = _round_up(L, lt)
    num_j = l_full // lt

    # Pad channels / length (zeros).  Right-padded tail columns produce garbage
    # outputs that are sliced off below -- safe for a causal conv.
    x_in = x_ncl
    if C_in_p != C_in or l_full != L:
        x_in = jnp.pad(x_ncl, ((0, 0), (0, C_in_p - C_in), (0, l_full - L)))
    x_in = x_in.astype(in_dtype)

    w_p = weight
    if C_out_p != C_out or C_in_p != C_in:
        w_p = jnp.pad(weight, ((0, C_out_p - C_out), (0, C_in_p - C_in), (0, 0)))
    # (C_out_p, C_in_p, K) -> (C_out_p, K*C_in_p), rows ordered [tap0 ch*, tap1 ch*, ...].
    w2 = jnp.transpose(w_p, (0, 2, 1)).reshape(C_out_p, kc).astype(in_dtype)
    b2 = jnp.pad(bias, (0, C_out_p - C_out)).reshape(C_out_p, 1).astype(jnp.float32)

    compiler_params = pltpu.CompilerParams(
        dimension_semantics=("parallel", "parallel"),   # no cross-iteration state
        vmem_limit_bytes=vmem_limit)

    if pad > 0:
        halo_blocks = lt // halo_pad
        kernel = functools.partial(_conv1d_kernel_halo, kernel_size=K,
                                   dilation=dilation, pad=pad, halo_pad=halo_pad)
        in_specs = [
            pl.BlockSpec((1, C_in_p, lt), lambda n, j: (n, 0, j)),
            # Halo: the halo_pad columns just before this tile; clamped to block 0
            # at j == 0 (value is zeroed in-kernel -> the causal left zero-pad).
            pl.BlockSpec((1, C_in_p, halo_pad),
                         lambda n, j: (n, 0, jnp.maximum(j * halo_blocks - 1, 0))),
            pl.BlockSpec((C_out_p, kc), lambda n, j: (0, 0)),
            pl.BlockSpec((C_out_p, 1), lambda n, j: (0, 0)),
        ]
        args = (x_in, x_in, w2, b2)
    else:
        kernel = _conv1d_kernel_nohalo
        in_specs = [
            pl.BlockSpec((1, C_in_p, lt), lambda n, j: (n, 0, j)),
            pl.BlockSpec((C_out_p, kc), lambda n, j: (0, 0)),
            pl.BlockSpec((C_out_p, 1), lambda n, j: (0, 0)),
        ]
        args = (x_in, w2, b2)

    out = pl.pallas_call(
        kernel,
        out_shape=jax.ShapeDtypeStruct((N, C_out_p, l_full), out_dtype),
        grid_spec=pltpu.PrefetchScalarGridSpec(
            num_scalar_prefetch=0,
            grid=(N, num_j),
            in_specs=in_specs,
            out_specs=pl.BlockSpec((1, C_out_p, lt), lambda n, j: (n, 0, j)),
        ),
        compiler_params=compiler_params,
    )(*args)
    return out[:, :C_out, :L]


if __name__ == "__main__":
    def _ref(x, weight, bias, dilation):
        K = weight.shape[-1]
        p = (K - 1) * dilation
        y = jax.lax.conv_general_dilated(
            jnp.pad(x, ((0, 0), (0, 0), (p, 0))), weight,
            window_strides=(1,), padding="VALID", rhs_dilation=(dilation,),
            dimension_numbers=("NCH", "OIH", "NCH"))
        return y + bias[None, :, None]

    key = jax.random.PRNGKey(0)

    # Case 1: Conv1D(in_channels=4, out_channels=8, kernel_size=3, dilation=2)
    # on (N=2, C_in=4, L=16) -- the module spec at small shapes.
    N, C_in, C_out, L, K, d = 2, 4, 8, 16, 3, 2
    k1, k2, k3, key = jax.random.split(key, 4)
    bound = 1.0 / (C_in * K) ** 0.5
    x = jax.random.normal(k1, (N, C_in, L), jnp.float32)
    w = jax.random.uniform(k2, (C_out, C_in, K), jnp.float32, -bound, bound)
    b = jax.random.uniform(k3, (C_out,), jnp.float32, -bound, bound)
    out = jax.block_until_ready(causal_conv1d(x, w, b, dilation=d))
    assert out.shape == (N, C_out, L), out.shape
    assert jnp.allclose(out, _ref(x, w, b, d), atol=1e-5, rtol=1e-5)

    # Case 2: multiple length tiles -> exercises the cross-tile causal halo fetch.
    N, C_in, C_out, L, K, d = 2, 16, 32, 300, 3, 2
    k1, k2, k3, key = jax.random.split(key, 4)
    bound = 1.0 / (C_in * K) ** 0.5
    x = jax.random.normal(k1, (N, C_in, L), jnp.float32)
    w = jax.random.uniform(k2, (C_out, C_in, K), jnp.float32, -bound, bound)
    b = jax.random.uniform(k3, (C_out,), jnp.float32, -bound, bound)
    ref2 = _ref(x, w, b, d)
    out = jax.block_until_ready(causal_conv1d(x, w, b, dilation=d, l_tile=128))
    assert out.shape == (N, C_out, L), out.shape
    assert jnp.allclose(out, ref2, atol=1e-4, rtol=1e-4)

    # Case 3: bf16 compute path (halved HBM traffic, f32 accumulation retained).
    out_bf16 = jax.block_until_ready(
        causal_conv1d(x, w, b, dilation=d, l_tile=128, compute_dtype=jnp.bfloat16))
    assert out_bf16.shape == (N, C_out, L), out_bf16.shape
    assert jnp.allclose(out_bf16, ref2, atol=5e-2, rtol=5e-2)

    print("KERNEL_OK")
</pallas_src>

<mosaic_0001>
module attributes {stable_mosaic.version = 11 : i64} {
  func.func @_conv1d_kernel_halo(%arg0: i32, %arg1: i32, %arg2: memref<1x8x128xf32, #tpu.memory_space<vmem>>, %arg3: memref<1x8x128xf32, #tpu.memory_space<vmem>>, %arg4: memref<8x24xf32, #tpu.memory_space<vmem>>, %arg5: memref<8x1xf32, #tpu.memory_space<vmem>>, %arg6: memref<1x8x128xf32, #tpu.memory_space<vmem>>) attributes {dimension_semantics = [#tpu.dimension_semantics<parallel>, #tpu.dimension_semantics<parallel>], iteration_bounds = array<i64: 2, 1>, scalar_prefetch = 0 : i64, scratch_operands = 0 : i64, tpu.core_type = #tpu.core_type<tc>, window_params = [{transform_indices = @transform_0, window_bounds = array<i64: 1, 8, 128>}, {transform_indices = @transform_1, window_bounds = array<i64: 1, 8, 128>}, {pipeline_mode = #tpu.pipeline_mode<synchronous>, transform_indices = @transform_2, window_bounds = array<i64: 8, 24>}, {pipeline_mode = #tpu.pipeline_mode<synchronous>, transform_indices = @transform_3, window_bounds = array<i64: 8, 1>}, {transform_indices = @transform_4, window_bounds = array<i64: 1, 8, 128>}]} {
    %c0 = arith.constant 0 : index
    %c0_0 = arith.constant 0 : index
    %c0_1 = arith.constant 0 : index
    %0 = vector.load %arg2[%c0, %c0_0, %c0_1] : memref<1x8x128xf32, #tpu.memory_space<vmem>>, vector<1x8x128xf32>
    %1 = vector.shape_cast %0 : vector<1x8x128xf32> to vector<8x128xf32>
    %c0_2 = arith.constant 0 : index
    %c0_3 = arith.constant 0 : index
    %c0_4 = arith.constant 0 : index
    %2 = vector.load %arg3[%c0_2, %c0_3, %c0_4] : memref<1x8x128xf32, #tpu.memory_space<vmem>>, vector<1x8x128xf32>
    %3 = vector.shape_cast %2 : vector<1x8x128xf32> to vector<8x128xf32>
    %c0_i32 = arith.constant 0 : i32
    %4 = arith.cmpi sgt, %arg1, %c0_i32 : i32
    %cst = arith.constant 0.000000e+00 : f32
    %5 = vector.broadcast %cst : f32 to vector<8x128xf32>
    %6 = arith.select %4, %3, %5 : vector<8x128xf32>
    %7 = tpu.concatenate %6, %1 in 1 : vector<8x128xf32>, vector<8x128xf32> -> vector<8x256xf32>
    %8 = vector.extract_strided_slice %7 {offsets = [0, 124], sizes = [8, 128], strides = [1, 1]} : vector<8x256xf32> to vector<8x128xf32>
    %9 = vector.extract_strided_slice %7 {offsets = [0, 126], sizes = [8, 128], strides = [1, 1]} : vector<8x256xf32> to vector<8x128xf32>
    %10 = tpu.concatenate %8, %9, %1 in 0 : vector<8x128xf32>, vector<8x128xf32>, vector<8x128xf32> -> vector<24x128xf32>
    %c0_5 = arith.constant 0 : index
    %c0_6 = arith.constant 0 : index
    %11 = vector.load %arg4[%c0_5, %c0_6] : memref<8x24xf32, #tpu.memory_space<vmem>>, vector<8x24xf32>
    %cst_7 = arith.constant dense<0.000000e+00> : vector<8x128xf32>
    %12 = tpu.matmul %11, %10, %cst_7 {dimension_numbers = #tpu.dot_dimension_numbers<[1], [0], [0], [1], [0, 0, 1, 1], [], []>} : vector<8x24xf32>, vector<24x128xf32>, vector<8x128xf32> -> vector<8x128xf32>
    %c0_8 = arith.constant 0 : index
    %c0_9 = arith.constant 0 : index
    %13 = vector.load %arg5[%c0_8, %c0_9] : memref<8x1xf32, #tpu.memory_space<vmem>>, vector<8x1xf32>
    %14 = vector.broadcast %13 : vector<8x1xf32> to vector<8x128xf32>
    %15 = arith.addf %12, %14 : vector<8x128xf32>
    %c0_10 = arith.constant 0 : index
    %c0_11 = arith.constant 0 : index
    %c0_12 = arith.constant 0 : index
    %16 = vector.load %arg6[%c0_10, %c0_11, %c0_12] : memref<1x8x128xf32, #tpu.memory_space<vmem>>, vector<1x8x128xf32>
    %17 = vector.shape_cast %16 : vector<1x8x128xf32> to vector<8x128xf32>
    %18 = vector.shape_cast %15 : vector<8x128xf32> to vector<1x8x128xf32>
    tpu.vector_store %arg6[%c0_10, %c0_11, %c0_12], %18 {strides = array<i32>} : memref<1x8x128xf32, #tpu.memory_space<vmem>>, vector<1x8x128xf32>,
    return
  }
  func.func @transform_0(%arg0: i32, %arg1: i32) -> (i32, i32, i32) {
    %c0_i32 = arith.constant 0 : i32
    %c0_i32_0 = arith.constant 0 : i32
    return %arg0, %c0_i32, %arg1 : i32, i32, i32
  }
  func.func @transform_1(%arg0: i32, %arg1: i32) -> (i32, i32, i32) {
    %c1_i32 = arith.constant 1 : i32
    %0 = arith.muli %arg1, %c1_i32 : i32
    %c1_i32_0 = arith.constant 1 : i32
    %1 = arith.subi %0, %c1_i32_0 : i32
    %c0_i32 = arith.constant 0 : i32
    %2 = arith.maxsi %1, %c0_i32 : i32
    %c0_i32_1 = arith.constant 0 : i32
    %c0_i32_2 = arith.constant 0 : i32
    return %arg0, %c0_i32_1, %2 : i32, i32, i32
  }
  func.func @transform_2(%arg0: i32, %arg1: i32) -> (i32, i32) {
    %c0_i32 = arith.constant 0 : i32
    %c0_i32_0 = arith.constant 0 : i32
    %c0_i32_1 = arith.constant 0 : i32
    return %c0_i32, %c0_i32_0 : i32, i32
  }
  func.func @transform_3(%arg0: i32, %arg1: i32) -> (i32, i32) {
    %c0_i32 = arith.constant 0 : i32
    %c0_i32_0 = arith.constant 0 : i32
    %c0_i32_1 = arith.constant 0 : i32
    return %c0_i32, %c0_i32_0 : i32, i32
  }
  func.func @transform_4(%arg0: i32, %arg1: i32) -> (i32, i32, i32) {
    %c0_i32 = arith.constant 0 : i32
    %c0_i32_0 = arith.constant 0 : i32
    return %arg0, %c0_i32, %arg1 : i32, i32, i32
  }
}

</mosaic_0001>

<bundles_post_ra>
// kernel: tpu_custom_call.1
= control target key start
LH: loop header
LB: loop body
LE: loop exit
PB: predicated region body
PF: predicated region fallthrough
CT: control target
= control target key end

     0   :  { %9 = vsyncpa [#allocation3], 0  ;;  %s1053_s0 = inlined_call_operand.hbm [shape: f32[2,8,128], index: 0, kind: input, shape index: {}]   ;;  %s1054_s1 = inlined_call_operand.hbm [shape: f32[2,8,128], index: 1, kind: input, shape index: {}]   ;;  %s1055_s2 = inlined_call_operand.vmem [shape: f32[8,24], index: 2, kind: input, shape index: {}]   ;;  %s1056_s3 = inlined_call_operand.vmem [shape: f32[8,1], index: 3, kind: input, shape index: {}]   ;;  %s1057_s4 = inlined_call_operand.hbm [shape: f32[2,8,128], index: 4, kind: output, shape index: {}]  }
   0x1   :  { %11 = vsyncpa [#allocation3 + $0x1], 0 }
   0x2   :  { %12 = vsyncpa [#allocation6], 0 }
   0x3   :  { %14 = vsyncpa [#allocation6 + $0x1], 0 }
   0x4   :  { %15 = vsyncpa [#allocation4], 0 }
   0x5   :  { %17 = vsyncpa [#allocation4 + $0x1], 0  ;;  %s823_s15 = smov 0   ;;  %s825_s16 = smov 0  }
   0x6   :  { %s827_s17 = smov 0   ;;  %s829_s18 = smov 0  }
   0x7   :  { %s831_s19 = smov 0   ;;  %s833_s20 = smov 0  }
   0x8 LB: > { %s516_s21 = sadd.s32 4294967295, %s786_s20   ;;  %s517_s22 = sadd.s32 4294967294, %s786_s20   ;;  %s786_s20 = sphi %s833_s20, %s23_s20   ;;  %s782_s19 = sphi %s831_s19, %s1077_s19   ;;  %s778_s18 = sphi %s829_s18, %s1076_s18   ;;  %s774_s17 = sphi %s827_s17, %s1075_s17   ;;  %s770_s16 = sphi %s825_s16, %s1074_s16   ;;  %s766_s15 = sphi %s823_s15, %s1073_s15  }
   0x9   : > { %s35_s23 = sadd.s32 1, %s782_s19  ;;  %s44_s24 = sadd.s32 1, %s774_s17 }
   0xa   : > { %p37_p0 = scmp.ge.s32.totalorder %s35_s23, 2  ;;  %p51_p1 = scmp.ne.s32.totalorder %s774_s17, %s770_s16 }
   0xb   : > { %p52_p2 = scmp.eq.s32.totalorder %s786_s20, 0  ;;  %p57_p3 = scmp.ne.s32.totalorder %s770_s16, %s766_s15 }
   0xc   : > { %s1079_s23 = smov (%p37_p0, %s35_s23), 0  ;;  %p58_p5 = scmp.eq.s32.totalorder %s516_s21, 0 }
   0xd   : > { %p864_p4 = por %p52_p2, %p51_p1  ;;  %s39_s26 = ssub.s32 %s782_s19, %s1079_s23 }
   0xe   : > { %p159_p6 = scmp.eq.s32.totalorder %s516_s21, 1  ;;  %p42_p7 = scmp.eq.s32.totalorder %s39_s26, 0 }
   0xf   : > { %p870_p8 = por %p58_p5, %p57_p3  ;;  %p165_p10 = scmp.eq.s32.totalorder %s517_s22, 1 }
  0x10   : > { %p874_p9 = por %p159_p6, %p51_p1  ;;  %p566_p13 = scmp.lt.s32.totalorder %s786_s20, 2 }
  0x11   : > { %s1061_s27 = scalar_select %p870_p8, 1, 0 }
  0x12   : > { %s1062_s28 = scalar_select %p874_p9, 1, 0 }
  0x13   : > { %s879_s29 = scalar_select %p42_p7, %s774_s17, %s44_s24  }
  0x14   : > { %p881_p11 = por %p165_p10, %p57_p3  ;;  %s888_s5 = sand.u32 1, %s774_s17  }
  0x15   : > { %s520_s6 = sshll.u32 %s888_s5, 3  ;;  %s521_s7 = sshll.u32 %s782_s19, 7 }
  0x16   : > { %s1063_s30 = scalar_select %p881_p11, 1, 0 }
  0x17   : > { %s897_s10 = scalar_lea.hbm %s1053_s0, %s521_s7  ;;  %s195_s11 = scalar_lea.vmem [#allocation2], %s520_s6 }
  0x18   : > { %s203_s12 = sshll.u32 %s195_s11, 4  ;;  %p905_p0 = pnand %p566_p13, %p864_p4  ;;  %s901_s12 = int_to_ptr.vmem [resolvable:$true] %s203_s12 }
  0x19   : > { %s192_s14 = scalar_lea.sflag [#allocation3], %s888_s5  ;;  %s640_s21 = scalar_lea.hbm %s897_s10, 128 }
  0x1a   : > { %p641_p3 = scmp.ne.s32.totalorder %s897_s10, %s640_s21  ;;  %p642_p5 = pneg %p905_p0 }
  0x1b   : > { %s645_s25 = scalar_lea.hbm %s1053_s0, 256  ;;  %p646_p4 = scmp.lt.u32.totalorder %s897_s10, %s1053_s0 }
  0x1c   : > { %p643_p6 = pnand %p642_p5, %p641_p3  ;;  %p647_p10 = scmp.lt.u32.totalorder %s645_s25, %s640_s21 }
  0x1d   : > { %p649_p12 = scmp.lt.u32.totalorder %s640_s21, %s897_s10 }
  0x1e   : > { %p644_p7 = pneg %p643_p6  ;;  %p648_p13 = por %p647_p10, %p646_p4 }
  0x20   : > { %p650_p1 = por %p649_p12, %p648_p13 }
  0x22   : > { %p651_p2 = pnand %p650_p1, %p644_p7 }
  0x24   : > { %654 = shalt.err (!%p651_p2)
}
  0x25   : > { %s655_s9 = scalar_lea.vmem %s901_s12, 128  ;;  %s788_s11 = smov [#allocation2]  }
  0x26   : > { %p656_p3 = scmp.ne.s32.totalorder %s901_s12, %s655_s9  ;;  %s660_s22 = sshll.u32 %s788_s11, 4  ;;  %s661_s22 = int_to_ptr.vmem [resolvable:$false] %s660_s22 }
  0x27   : > { %s662_s24 = scalar_lea.vmem %s661_s22, 256  ;;  %p663_p9 = scmp.lt.s32.totalorder %s901_s12, %s661_s22 }
  0x28   : > { %p658_p6 = pnand %p656_p3, %p642_p5  ;;  %p664_p4 = scmp.lt.s32.totalorder %s662_s24, %s655_s9 }
  0x2a   : > { %p659_p11 = pneg %p658_p6  ;;  %p665_p10 = por %p664_p4, %p663_p9 }
  0x2c   : > { %p666_p12 = pnand %p665_p10, %p659_p11 }
  0x2e   : > { %669 = shalt.err (!%p666_p12)
}
  0x2f   : > { %558 = dma.hbm_to_vmem [thread:$0]  (!%p905_p0), %s897_s10, 128, %s901_s12, %s192_s14  }
  0x30   : > { %p1065_p1 = scmp.lt.s32.totalorder %s786_s20, 3  ;;  %p1066_p2 = scmp.ge.s32.totalorder %s786_s20, 1 }
  0x31   : > { %s950_s8 = scalar_lea.hbm %s1054_s1, %s521_s7  ;;  %s214_s9 = scalar_lea.vmem [#allocation5], %s520_s6 }
  0x32   : > { %p941_p7 = pnand %p1066_p2, %p1065_p1  ;;  %s225_s11 = sshll.u32 %s214_s9, 4  ;;  %s226_s11 = int_to_ptr.vmem [resolvable:$true] %s225_s11 }
  0x33   : > { %s211_s10 = scalar_lea.sflag [#allocation6], %s888_s5  ;;  %s670_s12 = scalar_lea.hbm %s950_s8, 128 }
  0x34   : > { %s1067_s21 = scalar_select %p941_p7, 1, 0 }
  0x35   : > { %p671_p9 = scmp.ne.s32.totalorder %s950_s8, %s670_s12  ;;  %s675_s7 = scalar_lea.hbm %s1054_s1, 256 }
  0x36   : > { %p676_p3 = scmp.lt.u32.totalorder %s950_s8, %s1054_s1  ;;  %p677_p6 = scmp.lt.u32.totalorder %s675_s7, %s670_s12 }
  0x37   : > { %p673_p11 = pnand %p671_p9, %p642_p5  ;;  %p679_p10 = scmp.lt.u32.totalorder %s670_s12, %s950_s8 }
  0x38   : > { %p678_p4 = por %p677_p6, %p676_p3 }
  0x39   : > { %p674_p13 = pneg %p673_p11 }
  0x3a   : > { %p680_p12 = por %p679_p10, %p678_p4 }
  0x3c   : > { %p681_p1 = pnand %p680_p12, %p674_p13 }
  0x3e   : > { %684 = shalt.err (!%p681_p1)
}
  0x3f   : > { %s685_s5 = scalar_lea.vmem %s226_s11, 128  ;;  %s789_s6 = smov [#allocation5]  }
  0x40   : > { %p686_p2 = scmp.ne.s32.totalorder %s226_s11, %s685_s5  ;;  %s690_s26 = sshll.u32 %s789_s6, 4  ;;  %s691_s26 = int_to_ptr.vmem [resolvable:$false] %s690_s26 }
  0x41   : > { %s692_s9 = scalar_lea.vmem %s691_s26, 256  ;;  %p693_p8 = scmp.lt.s32.totalorder %s226_s11, %s691_s26 }
  0x42   : > { %p688_p9 = pnand %p686_p2, %p642_p5  ;;  %p694_p7 = scmp.lt.s32.totalorder %s692_s9, %s685_s5 }
  0x44   : > { %p689_p11 = pneg %p688_p9  ;;  %p695_p3 = por %p694_p7, %p693_p8 }
  0x46   : > { %p696_p6 = pnand %p695_p3, %p689_p11 }
  0x48   : > { %699 = shalt.err (!%p696_p6)
}
  0x49   : > { %561 = dma.hbm_to_vmem [thread:$0]  (!%p905_p0), %s950_s8, 128, %s226_s11, %s211_s10  }
  0x4a   : > { %p1068_p13 = scmp.ne.s32.totalorder %s1067_s21, 0 }
  0x4b   : > { %s977_s12 = sand.u32 (!%p1068_p13), 1, %s770_s16   ;;  %p1069_p8 = scmp.ne.s32.totalorder (!%p1068_p13), %s1061_s27, 0 }
  0x4c   : > { %234 = sbr.rel (%p1068_p13) target bundleno = 562 (0x232), region = 36  ;;  %s525_s14 = sshll.u32 (!%p1068_p13), %s977_s12, 3 }
  0x4d   : > { %s237_s22 = scalar_lea.sflag (!%p1068_p13), [#allocation3], %s977_s12  ;;  %s240_s7 = scalar_lea.vmem (!%p1068_p13), [#allocation2], %s525_s14 }
  0x53   : > { %753 = dma.done.wait (%p1069_p8), %s237_s22, 128  }
  0x54   : > { %755 = vsyncadd (%p1069_p8), %s237_s22, 4294967168  ;;  %s246_s13 = scalar_lea.sflag [#allocation6], %s977_s12 }
  0x55   : > { %757 = dma.done.wait (%p1069_p8), %s246_s13, 128  }
  0x56   : > { %759 = vsyncadd (%p1069_p8), %s246_s13, 4294967168  ;;  %v282_v0 = vld [vmem:[%s240_s7] sm:$0xff]  ;;  %v790_v1 = vmov 0.0   ;;  %s791_s21 = smov 126   ;;  %s792_s8 = smov 4   ;;  %v794_v3 = vmov 0.0|0.0  }
  0x57   : > { %v623_v2 = vpack.i.bf16 %v282_v0, %v790_v1  ;;  %s793_s11 = smov 124   ;;  %546 = vmatprep.subr.bf16.mxu0 %v794_v3  ;;  %vm295_vm0 = vcmask 1031168   ;;  %vm795_vm1 = vmmov 0   ;;  %v796_v10 = vmov 0   ;;  %v300_v11 = vld [vmem:[%s1056_s3] sm:$0xff]  ;;  %s530_s5 = sshll.u32 %s778_s18, 7 }
  0x58   : > { %543 = vmatprep.mubr.msk.f32.mxu0 %vm795_vm1, %v790_v1  ;;  %638 = vset.pattern.permute.xlu1 %v796_v10  ;;  %vm316_vm2 = vcmask 31744   ;;  %v299_v22 = vld [vmem:[%s1055_s2] sm:$0xff]  ;;  %vm322_vm3 = vcmask 195584   ;;  %s278_s6 = scalar_lea.vmem [#allocation7], %s525_s14  ;;  %s1004_s7 = scalar_lea.hbm %s1057_s4, %s530_s5 }
  0x59   : > { %624 = vrot.lane.b32.xlu0 %v623_v2, %s791_s21  ;;  %629 = vrot.lane.b32.xlu1 %v623_v2, %s792_s8  ;;  %s412_s26 = sshll.u32 %s278_s6, 4  ;;  %s398_s13 = scalar_lea.sflag [#allocation4], %s977_s12  ;;  %s1006_s26 = int_to_ptr.vmem [resolvable:$true] %s412_s26 }
  0x5a   : > { %639 = vset.pattern.permute.xlu0 %v796_v10  ;;  %s700_s21 = scalar_lea.vmem %s1006_s26, 128  ;;  %p1070_p5 = scmp.ne.s32.totalorder %s1062_s28, 0 }
  0x5b   : > { %p701_p0 = scmp.ne.s32.totalorder %s1006_s26, %s700_s21  ;;  %s797_s18 = smov [#allocation7]  }
  0x5c   : > { %s704_s14 = sshll.u32 %s797_s18, 4  ;;  %s705_s14 = int_to_ptr.vmem [resolvable:$false] %s704_s14 }
  0x5d   : > { %297 = vrot.lane.b32.xlu0 %v282_v0, %s793_s11  ;;  %p702_p7 = pnand %p701_p0, %p1070_p5  ;;  %p707_p10 = scmp.lt.s32.totalorder %s1006_s26, %s705_s14 }
  0x5f   : > { %p703_p4 = pneg %p702_p7 }
  0xcb   : > { %v625_v4 = vpop.permute.xlu0 %624  ;;  %v630_v12 = vpop.permute.xlu1 %629 }
  0xcc   : > { %v627_v5 = vunpack.i.h.bf16 %v625_v4  ;;  %v626_v6 = vunpack.i.l.bf16 %v625_v4  ;;  %v632_v13 = vunpack.i.h.bf16 %v630_v12  ;;  %v631_v14 = vunpack.i.l.bf16 %v630_v12 }
  0xce   : > { %v296_v7 = vsel %vm295_vm0, %v626_v6, %v627_v5  ;;  %v317_v18 = vsel %vm316_vm2, %v631_v14, %v632_v13 }
  0xcf   : > { %v633_v8 = vpack.i.bf16 %v627_v5, %v296_v7  ;;  %v298_v9 = vpop.permute.xlu0 %297 }
  0xd0   : > { %314 = vrot.lane.b32.xlu0 %v298_v9, %s792_s8 }
  0xd1   : > { %634 = vrot.lane.b32.xlu1 %v633_v8, %s792_s8  ;;  %s706_s8 = scalar_lea.vmem %s705_s14, 256 }
  0xd2   : > { %p708_p12 = scmp.lt.s32.totalorder %s706_s8, %s700_s21 }
  0xd4   : > { %p709_p1 = por %p708_p12, %p707_p10 }
  0xd5   : > { %303 = vperm.xlu1 %638, %v300_v11  }
  0xd6   : > { %p710_p2 = pnand %p709_p1, %p703_p4 }
 0x142   : > { %v315_v21 = vpop.permute.xlu0 %314 }
 0x143   : > { %v635_v15 = vpop.permute.xlu1 %634 }
 0x144   : > { %v637_v16 = vunpack.i.h.bf16 %v635_v15  ;;  %v636_v17 = vunpack.i.l.bf16 %v635_v15 }
 0x146   : > { %v318_v19 = vsel %vm316_vm2, %v636_v17, %v637_v16 }
 0x147   : > { %v547_v20 = vpack.c.bf16 %v318_v19, %v317_v18 }
 0x149   : > { %548 = vmatpush3.bf16.msra.mxu0 %v547_v20 }
 0x14a   : > { %541 = vmatprep.subr.mxu0 %v790_v1 }
 0x14d   : > { %542 = vmatpush3.msra.mxu0 %v315_v21 }
 0x14e   : > { %544 = vmatmul.mubr.msk.f32.vlgmr.msra.gmra.mrb[0].mxu0 %vm322_vm3, %v299_v22 }
 0x154   : > { %v304_v23 = vpop.permute.xlu1 %303 }
 0x221   : > { %v392_v24 = vpop.f32.mrb[0].mxu0 }
 0x222   : > { %v393_v25 = vadd.f32 %v392_v24, %v304_v23  ;;  %v545_v26 = vpop.f32.mrb[1].mxu0 }
 0x224   : > { %396 = vst [vmem:[%s278_s6] sm:$0xff] %v393_v25 }
 0x225   : > { %713 = shalt.err (!%p710_p2)
}
 0x226   : > { %s714_s12 = scalar_lea.hbm %s1004_s7, 128  ;;  %s718_s10 = scalar_lea.hbm %s1057_s4, 256 }
 0x227   : > { %p715_p9 = scmp.ne.s32.totalorder %s1004_s7, %s714_s12  ;;  %p719_p6 = scmp.lt.u32.totalorder %s1004_s7, %s1057_s4 }
 0x228   : > { %p720_p13 = scmp.lt.u32.totalorder %s718_s10, %s714_s12  ;;  %p722_p0 = scmp.lt.u32.totalorder %s714_s12, %s1004_s7 }
 0x229   : > { %p716_p11 = pnand %p715_p9, %p1070_p5 }
 0x22a   : > { %p721_p8 = por %p720_p13, %p719_p6 }
 0x22b   : > { %p717_p3 = pneg %p716_p11 }
 0x22c   : > { %p723_p7 = por %p722_p0, %p721_p8 }
 0x22e   : > { %p724_p4 = pnand %p723_p7, %p717_p3 }
 0x230   : > { %727 = shalt.err (!%p724_p4)
}
 0x231   : > { %553 = dma.vmem_to_hbm [thread:$0]  (%p1070_p5), %s1006_s26, 128, %s1004_s7, %s398_s13  }
 0x232 PF: > { %s424_s5 = sand.u32 1, %s766_s15   ;;  %p1071_p10 = scmp.ne.s32.totalorder %s1063_s30, 0 }
 0x233   : > { %p1072_p12 = scmp.ge.s32.totalorder %s786_s20, 2  ;;  %s425_s6 = scalar_lea.sflag [#allocation4], %s424_s5 }
 0x235   : > { %p563_p1 = pnand %p1072_p12, %p1071_p10 }
 0x237   : > { %761 = dma.done.wait (!%p563_p1), %s425_s6, 128  }
 0x238   : > { %763 = vsyncadd (!%p563_p1), %s425_s6, 4294967168  ;;  %s23_s20 = sadd.s32 1, %s786_s20   ;;  %s1073_s15 = smov %s770_s16 }
 0x239   : > { %p20_p2 = scmp.ge.s32.totalorder %s23_s20, 4   ;;  %s1074_s16 = smov %s774_s17 }
 0x23a   : > { %s1075_s17 = smov %s879_s29  ;;  %s1076_s18 = smov %s782_s19 }
 0x23b   : > { %s1077_s19 = smov %s1079_s23  ;;  %22 = sbr.rel (!%p20_p2) target bundleno = 8 (0x8), region = 94 }
 0x242   :  { %430 = vsyncpa [#allocation3], 1 }
 0x243   :  { %432 = vsyncpa [#allocation3 + $0x1], 1 }
 0x244   :  { %433 = vsyncpa [#allocation6], 1 }
 0x245   :  { %435 = vsyncpa [#allocation6 + $0x1], 1 }
 0x246   :  { %436 = vsyncpa [#allocation4], 1 }
 0x247   :  { %438 = vsyncpa [#allocation4 + $0x1], 1 }

</bundles_post_ra>
